<compile_context>
chip_gen: v5e
topology: v5e:2x2
jax: 0.10.0
libtpu: 0.0.40
codegen_flags: <defaults>
</compile_context>

<pallas_src>
import functools

import jax
import jax.numpy as jnp
from jax.experimental import pallas as pl
from jax.experimental.pallas import tpu as pltpu


def _round_up(a, b):
    return ((a + b - 1) // b) * b


# ----------------------------------------------------------------------------
# marginal_prob_std (standard VE-SDE definition). Per-batch scalar work; kept
# in glue JAX since the module takes it as an injected function.
# ----------------------------------------------------------------------------
def marginal_prob_std(x, t, sigma=25.0):
    sigma = jnp.asarray(sigma, jnp.float32)
    t = t.astype(jnp.float32)
    std = jnp.sqrt((sigma ** (2.0 * t) - 1.0) / (2.0 * jnp.log(sigma)))
    mean = x  # mean_ is unused by Output_Block.forward
    return mean, std


# ----------------------------------------------------------------------------
# One-time parameter preparation (do this once at init, NOT per forward call).
# torch Linear weight is (F, E); store it transposed (E, F) in the activation
# dtype so the in-kernel dot is single-dtype. Bias stays f32 (added to the
# f32 accumulator). No lane padding: F is written at its true width.
# ----------------------------------------------------------------------------
def prepare_output_block_params(w, b, dtype=None):
    F, E = w.shape
    if dtype is None:
        dtype = w.dtype
    w_t = jnp.transpose(w).astype(dtype)           # (E, F)
    b_row = b.reshape(1, F).astype(jnp.float32)    # (1, F), f32
    return w_t, b_row


# ----------------------------------------------------------------------------
# Pallas kernel: one row-tile of  y = (x @ W^T + b) * inv_std
# ----------------------------------------------------------------------------
def _output_block_kernel(x_ref, w_ref, b_ref, inv_std_ref, o_ref):
    # x_ref      : (tile_m, E)   rows of the flattened (M, E) input
    # w_ref      : (E, F)        transposed weight (resident across the grid)
    # b_ref      : (1, F)        bias, f32 (resident)
    # inv_std_ref: (tile_m, 1)   per-row 1/std_, f32
    # o_ref      : (tile_m, F)   true-width output (no lane padding)
    y = jnp.dot(x_ref[...], w_ref[...], preferred_element_type=jnp.float32)
    y = (y + b_ref[...]) * inv_std_ref[...]
    o_ref[...] = y.astype(o_ref.dtype)


def output_block_forward(x, embed_t, e, x_cls, src_key_padding_mask,
                         original_t, params, marginal_prob_std_fn):
    """Mirrors Output_Block.forward(input_) with
    input_ = (x, embed_t, e, x_cls, src_key_padding_mask, original_t).
    `params` comes from prepare_output_block_params(w, b)."""
    w_t, b_row = params
    B, S, E = x.shape
    F = w_t.shape[1]
    M = B * S

    # Keep the dot single-dtype (one-off tiny cast if params were prepared in a
    # different dtype than the activations).
    if w_t.dtype != x.dtype:
        w_t = w_t.astype(x.dtype)

    # Per-batch 1/std expanded to a per-row (M, 1) f32 column (tiny).
    _, std_ = marginal_prob_std_fn(x, original_t)                      # (B,)
    inv_std = (1.0 / std_.astype(jnp.float32))                         # (B,)
    inv_rows = jnp.broadcast_to(inv_std[:, None], (B, S)).reshape(M, 1)

    x_flat = x.reshape(M, E)   # no dtype upcast, no padding copy

    # Row alignment for the block sublane dim (8 for 4-byte, 16 for 2-byte, ...).
    itemsize = jnp.dtype(x.dtype).itemsize
    row_align = {4: 8, 2: 16, 1: 32}.get(itemsize, 8)

    # Tile selection: big tiles amortize per-step overhead; for large problems
    # keep >= 2 grid steps so both v7x TensorCores get work. No wrapper pad:
    # Pallas handles the ragged last block (grid = cdiv).
    M_aligned = _round_up(M, row_align)
    if M_aligned <= 1024:
        tile_m = M_aligned
    else:
        tile_m = min(4096, _round_up(pl.cdiv(M_aligned, 2), row_align))
    grid_m = pl.cdiv(M, tile_m)

    out = pl.pallas_call(
        _output_block_kernel,
        out_shape=jax.ShapeDtypeStruct((M, F), x.dtype),
        grid_spec=pltpu.PrefetchScalarGridSpec(
            num_scalar_prefetch=0,
            grid=(grid_m,),
            in_specs=[
                pl.BlockSpec((tile_m, E), lambda i: (i, 0)),   # x rows
                pl.BlockSpec((E, F), lambda i: (0, 0)),        # W^T (resident)
                pl.BlockSpec((1, F), lambda i: (0, 0)),        # bias (resident)
                pl.BlockSpec((tile_m, 1), lambda i: (i, 0)),   # per-row 1/std
            ],
            out_specs=pl.BlockSpec((tile_m, F), lambda i: (i, 0)),
        ),
        compiler_params=pltpu.CompilerParams(
            dimension_semantics=("parallel",)),
    )(x_flat, w_t, b_row, inv_rows)

    return out.reshape(B, S, F)


# ----------------------------------------------------------------------------
# Reference (pure JAX) for sanity checking.
# ----------------------------------------------------------------------------
def output_block_ref(x, original_t, w, b, marginal_prob_std_fn):
    _, std_ = marginal_prob_std_fn(x, original_t)
    y = jnp.einsum("bse,fe->bsf", x.astype(jnp.float32),
                   w.astype(jnp.float32)) + b.astype(jnp.float32)
    return y / std_[:, None, None]


if __name__ == "__main__":
    # Small shapes consistent with the module.
    B, S = 2, 8            # batch, sequence length
    E = 32                 # embed_dim
    Fdim = 4               # n_feat_dim

    key = jax.random.PRNGKey(0)
    kx, kt, kw, kb = jax.random.split(key, 4)

    x = jax.random.normal(kx, (B, S, E), dtype=jnp.float32)
    original_t = jax.random.uniform(kt, (B,), dtype=jnp.float32,
                                    minval=1e-3, maxval=1.0)

    # Deterministic Linear(E -> Fdim) parameters (torch layout: weight (F, E)).
    w = jax.random.normal(kw, (Fdim, E), dtype=jnp.float32) * 0.05
    b = jax.random.normal(kb, (Fdim,), dtype=jnp.float32) * 0.05

    # Unused-by-forward auxiliary inputs (placeholders, as in the tuple input).
    embed_t = jnp.zeros((B, E), jnp.float32)
    e = jnp.zeros((B, S), jnp.float32)
    x_cls = jnp.zeros((B, 1, E), jnp.float32)
    src_key_padding_mask = jnp.zeros((B, S), jnp.bool_)

    mps = functools.partial(marginal_prob_std, sigma=25.0)

    # --- f32 path: exact check against the reference ------------------------
    params_f32 = prepare_output_block_params(w, b, dtype=jnp.float32)
    out = output_block_forward(x, embed_t, e, x_cls, src_key_padding_mask,
                               original_t, params_f32, mps)
    out = jax.block_until_ready(out)

    ref = output_block_ref(x, original_t, w, b, mps)
    assert out.shape == (B, S, Fdim)
    assert jnp.allclose(out, ref, atol=1e-5, rtol=1e-5), "mismatch vs reference"

    # --- bf16 I/O path (halved HBM traffic): smoke run -----------------------
    params_bf16 = prepare_output_block_params(w, b, dtype=jnp.bfloat16)
    out_bf16 = output_block_forward(
        x.astype(jnp.bfloat16), embed_t, e, x_cls, src_key_padding_mask,
        original_t, params_bf16, mps)
    out_bf16 = jax.block_until_ready(out_bf16)
    assert out_bf16.shape == (B, S, Fdim)
    assert out_bf16.dtype == jnp.bfloat16
    assert bool(jnp.all(jnp.isfinite(out_bf16.astype(jnp.float32))))

    print("KERNEL_OK")
</pallas_src>

<mosaic_0001>
module attributes {stable_mosaic.version = 11 : i64} {
  func.func @_output_block_kernel(%arg0: i32, %arg1: memref<16x32xf32, #tpu.memory_space<vmem>>, %arg2: memref<32x4xf32, #tpu.memory_space<vmem>>, %arg3: memref<1x4xf32, #tpu.memory_space<vmem>>, %arg4: memref<16x1xf32, #tpu.memory_space<vmem>>, %arg5: memref<16x4xf32, #tpu.memory_space<vmem>>) attributes {dimension_semantics = [#tpu.dimension_semantics<parallel>], iteration_bounds = array<i64: 1>, scalar_prefetch = 0 : i64, scratch_operands = 0 : i64, tpu.core_type = #tpu.core_type<tc>, window_params = [{transform_indices = @transform_0, window_bounds = array<i64: 16, 32>}, {pipeline_mode = #tpu.pipeline_mode<synchronous>, transform_indices = @transform_1, window_bounds = array<i64: 32, 4>}, {pipeline_mode = #tpu.pipeline_mode<synchronous>, transform_indices = @transform_2, window_bounds = array<i64: 1, 4>}, {transform_indices = @transform_3, window_bounds = array<i64: 16, 1>}, {transform_indices = @transform_4, window_bounds = array<i64: 16, 4>}]} {
    %c0 = arith.constant 0 : index
    %c0_0 = arith.constant 0 : index
    %0 = vector.load %arg1[%c0, %c0_0] : memref<16x32xf32, #tpu.memory_space<vmem>>, vector<16x32xf32>
    %c0_1 = arith.constant 0 : index
    %c0_2 = arith.constant 0 : index
    %1 = vector.load %arg2[%c0_1, %c0_2] : memref<32x4xf32, #tpu.memory_space<vmem>>, vector<32x4xf32>
    %cst = arith.constant dense<0.000000e+00> : vector<16x4xf32>
    %2 = tpu.matmul %0, %1, %cst {dimension_numbers = #tpu.dot_dimension_numbers<[1], [0], [0], [1], [0, 0, 1, 1], [], []>} : vector<16x32xf32>, vector<32x4xf32>, vector<16x4xf32> -> vector<16x4xf32>
    %c0_3 = arith.constant 0 : index
    %c0_4 = arith.constant 0 : index
    %3 = vector.load %arg3[%c0_3, %c0_4] : memref<1x4xf32, #tpu.memory_space<vmem>>, vector<1x4xf32>
    %4 = vector.broadcast %3 : vector<1x4xf32> to vector<16x4xf32>
    %5 = arith.addf %2, %4 : vector<16x4xf32>
    %c0_5 = arith.constant 0 : index
    %c0_6 = arith.constant 0 : index
    %6 = vector.load %arg4[%c0_5, %c0_6] : memref<16x1xf32, #tpu.memory_space<vmem>>, vector<16x1xf32>
    %7 = vector.broadcast %6 : vector<16x1xf32> to vector<16x4xf32>
    %8 = arith.mulf %5, %7 : vector<16x4xf32>
    %c0_7 = arith.constant 0 : index
    %c0_8 = arith.constant 0 : index
    %9 = vector.load %arg5[%c0_7, %c0_8] : memref<16x4xf32, #tpu.memory_space<vmem>>, vector<16x4xf32>
    tpu.vector_store %arg5[%c0_7, %c0_8], %8 {strides = array<i32>} : memref<16x4xf32, #tpu.memory_space<vmem>>, vector<16x4xf32>,
    return
  }
  func.func @transform_0(%arg0: i32) -> (i32, i32) {
    %c0_i32 = arith.constant 0 : i32
    %c0_i32_0 = arith.constant 0 : i32
    return %arg0, %c0_i32 : i32, i32
  }
  func.func @transform_1(%arg0: i32) -> (i32, i32) {
    %c0_i32 = arith.constant 0 : i32
    %c0_i32_0 = arith.constant 0 : i32
    %c0_i32_1 = arith.constant 0 : i32
    return %c0_i32, %c0_i32_0 : i32, i32
  }
  func.func @transform_2(%arg0: i32) -> (i32, i32) {
    %c0_i32 = arith.constant 0 : i32
    %c0_i32_0 = arith.constant 0 : i32
    %c0_i32_1 = arith.constant 0 : i32
    return %c0_i32, %c0_i32_0 : i32, i32
  }
  func.func @transform_3(%arg0: i32) -> (i32, i32) {
    %c0_i32 = arith.constant 0 : i32
    %c0_i32_0 = arith.constant 0 : i32
    return %arg0, %c0_i32 : i32, i32
  }
  func.func @transform_4(%arg0: i32) -> (i32, i32) {
    %c0_i32 = arith.constant 0 : i32
    %c0_i32_0 = arith.constant 0 : i32
    return %arg0, %c0_i32 : i32, i32
  }
}

</mosaic_0001>

<bundles_post_ra>
// kernel: tpu_custom_call.1
= control target key start
LH: loop header
LB: loop body
LE: loop exit
PB: predicated region body
PF: predicated region fallthrough
CT: control target
= control target key end

     0   :  { %v87_v2 = vmov 0   ;;  %vm27_vm0 = vcmask 261120   ;;  %vm71_vm1 = vcmask 31744   ;;  %s146_s1 = inlined_call_operand.vmem [shape: f32[32,4], index: 1, kind: input, shape index: {}]   ;;  %s147_s3 = inlined_call_operand.vmem [shape: f32[16,1], index: 3, kind: input, shape index: {}]   ;;  %s148_s2 = inlined_call_operand.vmem [shape: f32[1,4], index: 2, kind: input, shape index: {}]   ;;  %s149_s0 = inlined_call_operand.vmem [shape: f32[16,32], index: 0, kind: input, shape index: {}]   ;;  %s150_s4 = inlined_call_operand.vmem [shape: f32[16,4], index: 4, kind: output, shape index: {}]  }
   0x1   :  { %v22_v0 = vld [vmem:[%s146_s1 + $0x18] sm:$0xff]  ;;  %v21_v1 = vld [vmem:[%s146_s1 + $0x10] sm:$0xff]  ;;  %85 = vset.pattern.permute.xlu0 %v87_v2  ;;  %v57_v3 = vld [vmem:[%s147_s3] sm:$0xff] }
   0x2   :  { %46 = vmatpush.msra.mxu0 %v22_v0  ;;  %80 = vmatpush.msra.mxu1 %v22_v0  ;;  %v20_v4 = vld [vmem:[%s146_s1 + $0x8] sm:$0xff]  ;;  %v19_v5 = vld [vmem:[%s146_s1] sm:$0xff] }
   0x3   :  { %61 = vperm.xlu0 %85, %v57_v3   ;;  %v17_v6 = vld [vmem:[%s149_s0] sm:$0xff]  ;;  %v18_v7 = vld [vmem:[%s149_s0 + $0x8] sm:$0xff] }
   0x4   :  { %47 = vmatpush.msra.mxu0 %v21_v1  ;;  %81 = vmatpush.msra.mxu1 %v21_v1  ;;  %v58_v8 = vld [vmem:[%s147_s3 + $0x8] sm:$0xff]  ;;  %v86_v10 = vld [vmem:[%s148_s2] ss:$0 sm:$0xff] }
   0x6   :  { %48 = vmatpush.msra.mxu0 %v20_v4  ;;  %82 = vmatpush.msra.mxu1 %v20_v4 }
   0x8   :  { %49 = vmatpush.msra.mxu0 %v19_v5  ;;  %83 = vmatpush.msra.mxu1 %v19_v5 }
   0x9   :  { %78 = vmatmul.msk.f32.vlgmr.msra.gmra.mxu0 %vm27_vm0, %v17_v6  ;;  %79 = vmatmul.msk.f32.vlgmr.msra.gmra.mxu1 %vm27_vm0, %v18_v7 }
   0xb   :  { %66 = vperm.xlu0 %85, %v58_v8  }
  0x75   :  { %v62_v9 = vpop.permute.xlu0 %61 }
  0x7d   :  { %v67_v15 = vpop.permute.xlu0 %66 }
  0x86   :  { %v51_v11 = vpop.f32.mrf.mxu0  ;;  %v54_v12 = vpop.f32.mrf.mxu1 }
  0x87   :  { %v52_v13 = vadd.f32 %v86_v10, %v51_v11  ;;  %v55_v14 = vadd.f32 %v86_v10, %v54_v12 }
  0x89   :  { %v69_v16 = vmul.f32 %v62_v9, %v52_v13  ;;  %v70_v17 = vmul.f32 %v67_v15, %v55_v14 }
  0x8b   :  { %72 = vst.msk [vmem:[%s150_s4] sm:$0xff] %vm71_vm1, %v69_v16 }
  0x8c   :  { %73 = vst.msk [vmem:[%s150_s4 + $0x8] sm:$0xff] %vm71_vm1, %v70_v17 }

</bundles_post_ra>
